<compile_context>
chip_gen: v5e
topology: v5e:2x2
jax: 0.10.0
libtpu: 0.0.40
codegen_flags: <defaults>
</compile_context>

<pallas_src>
import jax
import jax.numpy as jnp
from jax.experimental import pallas as pl
from jax.experimental.pallas import tpu as pltpu

_LANES = 128
# 2048 rows x 128 lanes x 4 B = 1 MiB per tile; with double-buffered input and
# output BlockSpecs that's ~4 MiB of VMEM — comfortably within every chip's
# scoped VMEM default (v5e/v6e 16-32 MiB, v7x 32 MiB).
_MAX_TILE_ROWS = 2048


def _copy_kernel(x_ref, o_ref):
    # Lane-dense (tile_r, 128) block copy: unmasked full-width stores.
    o_ref[...] = x_ref[...]


def _squeeze_copy_kernel(x_ref, o_ref):
    # Fallback path: (1, 1, H, W) -> (1, H, W), drops the squeezed channel.
    o_ref[...] = x_ref[0]


def _pick_row_tile(rows):
    """Largest row tile that (a) divides `rows`, (b) is a multiple of 8
    sublanes, (c) stays within the VMEM budget. If rows < 8 (or has no such
    divisor) use the full extent — a block equal to the full array dim is
    always legal."""
    if rows % 8 != 0:
        return rows
    t = _MAX_TILE_ROWS
    while t >= 8:
        if t <= rows and rows % t == 0:
            return t
        t //= 2
    return rows


def squeeze_dim1(x):
    """x: (B, 1, H, W) -> (B, H, W), equivalent to torch's x.squeeze(1)."""
    B, C, H, W = x.shape
    assert C == 1, "dim 1 must be size 1 to be squeezed"
    out_shape = (B, H, W)
    total = B * H * W

    if total % _LANES == 0:
        rows = total // _LANES
        # Free metadata ops (squeeze + flatten) handled by XLA, not the kernel.
        flat = x.reshape(rows, _LANES)
        tile_r = _pick_row_tile(rows)
        grid = (rows // tile_r,)
        out_flat = pl.pallas_call(
            _copy_kernel,
            out_shape=jax.ShapeDtypeStruct((rows, _LANES), x.dtype),
            grid=grid,
            in_specs=[pl.BlockSpec((tile_r, _LANES), lambda i: (i, 0))],
            out_specs=pl.BlockSpec((tile_r, _LANES), lambda i: (i, 0)),
            compiler_params=pltpu.CompilerParams(
                dimension_semantics=("parallel",),
            ),
        )(flat)
        return out_flat.reshape(out_shape)

    # Fallback for element counts not divisible by 128 lanes: copy one batch
    # element per grid step (blocks equal to full trailing dims are legal).
    return pl.pallas_call(
        _squeeze_copy_kernel,
        out_shape=jax.ShapeDtypeStruct(out_shape, x.dtype),
        grid=(B,),
        in_specs=[pl.BlockSpec((1, 1, H, W), lambda b: (b, 0, 0, 0))],
        out_specs=pl.BlockSpec((1, H, W), lambda b: (b, 0, 0)),
        compiler_params=pltpu.CompilerParams(
            dimension_semantics=("parallel",),
        ),
    )(x)


if __name__ == "__main__":
    key = jax.random.PRNGKey(0)
    x = jax.random.normal(key, (2, 1, 16, 16), dtype=jnp.float32)

    out = squeeze_dim1(x)
    jax.block_until_ready(out)

    # correctness check against plain JAX squeeze
    ref = jnp.squeeze(x, axis=1)
    assert out.shape == (2, 16, 16)
    assert out.dtype == x.dtype
    assert jnp.array_equal(out, ref)

    print("KERNEL_OK")
</pallas_src>

<mosaic_0001>
module attributes {stable_mosaic.version = 11 : i64} {
  func.func @_copy_kernel(%arg0: i32, %arg1: memref<4x128xf32, #tpu.memory_space<vmem>>, %arg2: memref<4x128xf32, #tpu.memory_space<vmem>>) attributes {dimension_semantics = [#tpu.dimension_semantics<parallel>], iteration_bounds = array<i64: 1>, scalar_prefetch = 0 : i64, scratch_operands = 0 : i64, tpu.core_type = #tpu.core_type<tc>, window_params = [{transform_indices = @transform_0, window_bounds = array<i64: 4, 128>}, {transform_indices = @transform_1, window_bounds = array<i64: 4, 128>}]} {
    %c0 = arith.constant 0 : index
    %c0_0 = arith.constant 0 : index
    %0 = vector.load %arg1[%c0, %c0_0] : memref<4x128xf32, #tpu.memory_space<vmem>>, vector<4x128xf32>
    %c0_1 = arith.constant 0 : index
    %c0_2 = arith.constant 0 : index
    %1 = vector.load %arg2[%c0_1, %c0_2] : memref<4x128xf32, #tpu.memory_space<vmem>>, vector<4x128xf32>
    tpu.vector_store %arg2[%c0_1, %c0_2], %0 {strides = array<i32>} : memref<4x128xf32, #tpu.memory_space<vmem>>, vector<4x128xf32>,
    return
  }
  func.func @transform_0(%arg0: i32) -> (i32, i32) {
    %c0_i32 = arith.constant 0 : i32
    %c0_i32_0 = arith.constant 0 : i32
    return %arg0, %c0_i32 : i32, i32
  }
  func.func @transform_1(%arg0: i32) -> (i32, i32) {
    %c0_i32 = arith.constant 0 : i32
    %c0_i32_0 = arith.constant 0 : i32
    return %arg0, %c0_i32 : i32, i32
  }
}

</mosaic_0001>

<bundles_post_ra>
// kernel: tpu_custom_call.1
= control target key start
LH: loop header
LB: loop body
LE: loop exit
PB: predicated region body
PF: predicated region fallthrough
CT: control target
= control target key end

     0   :  { %6 = vsyncpa [#allocation3], 0  ;;  %s114_s0 = inlined_call_operand.hbm [shape: f32[4,128], index: 0, kind: input, shape index: {}]   ;;  %s115_s1 = inlined_call_operand.hbm [shape: f32[4,128], index: 1, kind: output, shape index: {}]  }
   0x1   :  { %7 = vsyncpa [#allocation4], 0  ;;  %s13_s8 = sshll.u32 %s114_s0, 4  ;;  %s96_s9 = smov [#allocation2]   ;;  %s14_s8 = int_to_ptr.hbm [resolvable:$true] %s13_s8 }
   0x2   :  { %s15_s10 = sshll.u32 %s96_s9, 4  ;;  %s16_s10 = int_to_ptr.vmem [resolvable:$true] %s15_s10 }
   0x3   :  { %18 = dma.hbm_to_vmem [thread:$0]  %s14_s8, 64, %s16_s10, [#allocation3]  }
   0x4   :  { %92 = dma.done.wait [#allocation3], 64  }
   0x5   :  { %93 = vsyncadd [#allocation3], 4294967232  ;;  %s97_s11 = smov [#allocation5]   ;;  %s32_s15 = sshll.u32 %s115_s1, 4  ;;  %v23_v0 = vld [vmem:[#allocation2] sm:$0xf]  ;;  %s33_s15 = int_to_ptr.hbm [resolvable:$true] %s32_s15 }
   0x6   :  { %s30_s12 = sshll.u32 %s97_s11, 4  ;;  %24 = vst [vmem:[#allocation5] sm:$0xf] %v23_v0  ;;  %s31_s12 = int_to_ptr.vmem [resolvable:$true] %s30_s12 }
   0x7   :  { %35 = dma.vmem_to_hbm [thread:$0]  %s31_s12, 64, %s33_s15, [#allocation4]  }
   0x8   :  { %94 = dma.done.wait [#allocation4], 64  }
   0x9   :  { %95 = vsyncadd [#allocation4], 4294967232 }
   0xa   :  { %40 = vsyncpa [#allocation3], 1 }
   0xb   :  { %41 = vsyncpa [#allocation4], 1 }

</bundles_post_ra>
